<compile_context>
chip_gen: v6e
topology: v6e:2x2x1
jax: 0.10.0
libtpu: 0.0.40
codegen_flags: <defaults>
</compile_context>

<pallas_src>
import functools

import jax
import jax.numpy as jnp
from jax.experimental import pallas as pl
from jax.experimental.pallas import tpu as pltpu


# Set to jnp.bfloat16 on v6e/v7x for ~2x MXU throughput and half the VMEM/DMA
# bytes for x / weights / inter-layer activations (loosen the tolerance below).
# Hidden state, pre-activations (p_s scratch) and tanh stay f32 in all modes.
MATMUL_DTYPE = jnp.float32

# Below this sequence length the recurrence is fully unrolled in Python; above
# it a lax.fori_loop(unroll=4) keeps vreg pressure / instruction memory bounded.
_UNROLL_T = 16


def _dot(a, b):
    # Weights arrive pre-cast from the wrapper; only the (small) activation
    # operand may need an in-kernel cast.  f32 accumulation always.
    return jnp.dot(a.astype(b.dtype), b, preferred_element_type=jnp.float32)


def _block_diag(a, b):
    """blockdiag(a, b) so that [hf | hb] @ blockdiag == [hf@a | hb@b]."""
    top = jnp.concatenate([a, jnp.zeros((a.shape[0], b.shape[1]), a.dtype)], 1)
    bot = jnp.concatenate([jnp.zeros((b.shape[0], a.shape[1]), b.dtype), b], 1)
    return jnp.concatenate([top, bot], axis=0)


def _vmem_limit_bytes(arrays, extra_bytes):
    need = sum(a.size * a.dtype.itemsize for a in arrays) + extra_bytes
    # 2x headroom for compiler temporaries; clamp to [16 MiB, 64 MiB] which is
    # safe on every generation (v5e scoped default 16 MiB, v7x physical 64 MiB).
    return int(min(64 << 20, max(16 << 20, 2 * need + (1 << 20))))


# ----------------------------------------------------------------------------
# Shared bidirectional recurrence over a precomputed input projection.
#   p_s:      (T, BP, 2H) f32 scratch, [x@Wih_f + b_f | x@Wih_b + b_b]
#   mask_ref: (T, BP, 1)  f32, 1.0 iff t < len[b] (padded batch rows are 0)
#   whh:      (2H, 2H)    block-diag(W_hh_f, W_hh_b), already loaded from VMEM
#   out_ref:  (T, BP, 2H) ref or None; per-timestep outputs, zero where padded
# Returns the final hidden state h = [h_fwd | h_bwd], shape (BP, 2H), f32.
# ----------------------------------------------------------------------------
def _bidir_recurrence(T, H, p_s, mask_ref, whh, out_ref):
    BP = p_s.shape[1]
    fwd_lane = jax.lax.broadcasted_iota(jnp.int32, (BP, 2 * H), 1) < H
    h0 = jnp.zeros((BP, 2 * H), jnp.float32)

    def step(h, tf, tb):
        # Gather the two pre-activation halves (fwd @ t=tf, bwd @ t=tb) into a
        # single (BP, 2H) tile: lane-masked select, no lane movement.
        p_cat = jnp.where(fwd_lane, p_s[tf], p_s[tb])
        m_f = mask_ref[tf]                        # (BP, 1) f32 multiplier
        m_b = mask_ref[tb]
        m_cat = jnp.where(fwd_lane, m_f, m_b)     # (BP, 2H)
        # ONE fused recurrent matmul + ONE tanh for both directions.
        h_new = jnp.tanh(p_cat + _dot(h, whh))
        if out_ref is not None:
            # pad_packed_sequence pads with zeros at t >= len.
            out_ref[tf, :, :H] = (h_new[:, :H] * m_f).astype(out_ref.dtype)
            out_ref[tb, :, H:] = (h_new[:, H:] * m_b).astype(out_ref.dtype)
        # Carry: keep the previous state where the timestep is padding.
        return jnp.where(m_cat > 0.0, h_new, h)

    if T <= _UNROLL_T:                            # tiny T: full unroll
        h = h0
        for i in range(T):
            h = step(h, i, T - 1 - i)
        return h
    return jax.lax.fori_loop(
        0, T, lambda i, h: step(h, i, T - 1 - i), h0, unroll=4)


# ----------------------------------------------------------------------------
# Pallas kernel: one intermediate bidirectional vanilla-RNN layer.
# x_ref:    (T, BP, E_in)  time-major input (MATMUL_DTYPE)
# mask_ref: (T, BP, 1)     f32 validity multiplier
# wih_ref:  (E_in, 2H)     [W_ih_fwd | W_ih_bwd]        (pre-transposed)
# whh_ref:  (2H, 2H)       block-diag(W_hh_fwd, W_hh_bwd)
# bias_ref: (1, 2H)        [b_fwd | b_bwd] (b_ih + b_hh combined, f32)
# out_ref:  (T, BP, 2H)    [fwd outputs | bwd outputs], zero where padded
# ----------------------------------------------------------------------------
def _rnn_bidir_layer_kernel(T, H, x_ref, mask_ref, wih_ref, whh_ref, bias_ref,
                            out_ref, p_s):
    BP, E = x_ref.shape[1], x_ref.shape[2]
    # Hoisted input projection for BOTH directions (+ bias fold): one large MXU
    # matmul instead of 2*T tiny ones inside the serial recurrence.
    p = _dot(x_ref[...].reshape(T * BP, E), wih_ref[...]) + bias_ref[...]
    p_s[...] = p.reshape(T, BP, 2 * H)
    _bidir_recurrence(T, H, p_s, mask_ref, whh_ref[...], out_ref)


def rnn_bidir_layer(x, mask, wih, whh_blk, bias, *, T, H):
    BP = x.shape[1]
    out_bytes = T * BP * 2 * H * jnp.dtype(MATMUL_DTYPE).itemsize
    scratch_bytes = T * BP * 2 * H * 4
    vmem = pl.BlockSpec(memory_space=pltpu.MemorySpace.VMEM)
    return pl.pallas_call(
        functools.partial(_rnn_bidir_layer_kernel, T, H),
        out_shape=jax.ShapeDtypeStruct((T, BP, 2 * H), MATMUL_DTYPE),
        in_specs=[vmem] * 5,
        out_specs=vmem,
        scratch_shapes=[pltpu.VMEM((T, BP, 2 * H), jnp.float32)],
        compiler_params=pltpu.CompilerParams(
            vmem_limit_bytes=_vmem_limit_bytes(
                (x, mask, wih, whh_blk, bias), out_bytes + scratch_bytes)),
    )(x, mask, wih, whh_blk, bias)


# ----------------------------------------------------------------------------
# Pallas kernel: LAST bidirectional RNN layer fused with the MLP head.  In the
# last_hidden=True path the per-timestep outputs of the last layer are unused,
# so no per-step stores are emitted; the final hidden [h_fwd | h_bwd] IS
# cat(hidden[-2], hidden[-1]) and feeds relu(fc1) -> relu(fc2) -> sigmoid(fc3).
# ----------------------------------------------------------------------------
def _rnn_bidir_head_kernel(T, H, x_ref, mask_ref, wih_ref, whh_ref, bias_ref,
                           w1_ref, b1_ref, w2_ref, b2_ref, w3_ref, b3_ref,
                           out_ref, p_s):
    BP, E = x_ref.shape[1], x_ref.shape[2]
    p = _dot(x_ref[...].reshape(T * BP, E), wih_ref[...]) + bias_ref[...]
    p_s[...] = p.reshape(T, BP, 2 * H)
    h = _bidir_recurrence(T, H, p_s, mask_ref, whh_ref[...], None)
    h1 = jnp.maximum(_dot(h, w1_ref[...]) + b1_ref[...], 0.0)
    # TODO(synk): F.dropout(p=0.2) is stochastic; identity (eval mode) here.
    h2 = jnp.maximum(_dot(h1, w2_ref[...]) + b2_ref[...], 0.0)
    out_ref[...] = jax.nn.sigmoid(_dot(h2, w3_ref[...]) + b3_ref[...])


def rnn_bidir_head(x, mask, wih, whh_blk, bias, w1, b1, w2, b2, w3, b3, *, T, H):
    BP = x.shape[1]
    C = w3.shape[1]
    scratch_bytes = T * BP * 2 * H * 4
    vmem = pl.BlockSpec(memory_space=pltpu.MemorySpace.VMEM)
    return pl.pallas_call(
        functools.partial(_rnn_bidir_head_kernel, T, H),
        out_shape=jax.ShapeDtypeStruct((BP, C), jnp.float32),
        in_specs=[vmem] * 11,
        out_specs=vmem,
        scratch_shapes=[pltpu.VMEM((T, BP, 2 * H), jnp.float32)],
        compiler_params=pltpu.CompilerParams(
            vmem_limit_bytes=_vmem_limit_bytes(
                (x, mask, wih, whh_blk, bias, w1, b1, w2, b2, w3, b3),
                scratch_bytes + BP * C * 4)),
    )(x, mask, wih, whh_blk, bias, w1, b1, w2, b2, w3, b3)


# ----------------------------------------------------------------------------
# Full forward pass (glue in plain JAX: embedding gather, transpose, padding,
# mask and weight pre-casts / block-diag construction).
# ----------------------------------------------------------------------------
def rnn_forward(text, text_len, params, *, layers, hidden):
    B, T = text.shape
    H = hidden
    # Pad batch to the sublane count so every (BP, feat) timestep slab is
    # tile-aligned (8 rows for f32, 16 for bf16).  Padded rows get mask 0.
    sub = 8 if jnp.dtype(MATMUL_DTYPE).itemsize == 4 else 16
    BP = ((B + sub - 1) // sub) * sub

    x = params["emb"][text].astype(jnp.float32)               # (B, T, E) gather
    x = jnp.transpose(x, (1, 0, 2))                            # (T, B, E)
    x = jnp.pad(x, ((0, 0), (0, BP - B), (0, 0)))              # (T, BP, E)
    # Validity mask as an f32 multiplier, computed once.
    mask = (jnp.arange(T, dtype=jnp.int32)[:, None]
            < text_len.astype(jnp.int32)[None, :]).astype(jnp.float32)
    mask = jnp.pad(mask, ((0, 0), (0, BP - B)))[:, :, None]    # (T, BP, 1)

    inp = x.astype(MATMUL_DTYPE)
    for l in range(layers - 1):
        wih, whh_f, whh_b, bias = params["rnn"][l]
        inp = rnn_bidir_layer(
            inp, mask, wih.astype(MATMUL_DTYPE),
            _block_diag(whh_f, whh_b).astype(MATMUL_DTYPE),
            bias.astype(jnp.float32), T=T, H=H)
        # TODO(synk): nn.RNN inter-layer dropout is stochastic; identity here.

    wih, whh_f, whh_b, bias = params["rnn"][layers - 1]
    out = rnn_bidir_head(
        inp, mask, wih.astype(MATMUL_DTYPE),
        _block_diag(whh_f, whh_b).astype(MATMUL_DTYPE),
        bias.astype(jnp.float32),
        params["w1"].astype(MATMUL_DTYPE), params["b1"].astype(jnp.float32),
        params["w2"].astype(MATMUL_DTYPE), params["b2"].astype(jnp.float32),
        params["w3"].astype(MATMUL_DTYPE), params["b3"].astype(jnp.float32),
        T=T, H=H)
    return out[:B]


# ----------------------------------------------------------------------------
# Pure-JAX reference (same math) for a correctness check.
# ----------------------------------------------------------------------------
def ref_forward(text, text_len, params, *, layers, hidden):
    B, T = text.shape
    H = hidden
    x = params["emb"][text].astype(jnp.float32)
    x = jnp.transpose(x, (1, 0, 2))                            # (T, B, E)
    lens = text_len.astype(jnp.int32)[:, None]
    inp = x
    hf = hb = None
    for l in range(layers):
        wih, whh_f, whh_b, bias = params["rnn"][l]
        wih_f, wih_b = wih[:, :H], wih[:, H:]
        b_f, b_b = bias[:, :H], bias[:, H:]
        hf = jnp.zeros((B, H), jnp.float32)
        out_f = []
        for t in range(T):
            new_h = jnp.tanh(inp[t] @ wih_f + hf @ whh_f + b_f)
            valid = t < lens
            hf = jnp.where(valid, new_h, hf)
            out_f.append(jnp.where(valid, new_h, 0.0))
        hb = jnp.zeros((B, H), jnp.float32)
        out_b = [None] * T
        for t in range(T - 1, -1, -1):
            new_h = jnp.tanh(inp[t] @ wih_b + hb @ whh_b + b_b)
            valid = t < lens
            hb = jnp.where(valid, new_h, hb)
            out_b[t] = jnp.where(valid, new_h, 0.0)
        inp = jnp.concatenate([jnp.stack(out_f), jnp.stack(out_b)], axis=-1)
    y = jnp.concatenate([hf, hb], axis=-1)
    y = jnp.maximum(y @ params["w1"] + params["b1"], 0.0)
    y = jnp.maximum(y @ params["w2"] + params["b2"], 0.0)
    return jax.nn.sigmoid(y @ params["w3"] + params["b3"])


# ----------------------------------------------------------------------------
def make_params(key, vocab, e, h, c, layers):
    keys = jax.random.split(key, 7 + 6 * layers)

    def u(k, shape, scale=0.1):
        return jax.random.uniform(k, shape, jnp.float32, -1.0, 1.0) * scale

    # nn.Embedding.from_pretrained(TEXT.vocab.vectors) -> fixed embedding table
    params = {
        "emb": u(keys[0], (vocab, e), 1.0),
        "rnn": [],
        # fc1: Linear(2H, 64), fc2: Linear(64, 32), fc3: Linear(32, C)
        "w1": u(keys[1], (2 * h, 64)), "b1": u(keys[2], (1, 64)),
        "w2": u(keys[3], (64, 32)),    "b2": u(keys[4], (1, 32)),
        "w3": u(keys[5], (32, c)),     "b3": u(keys[6], (1, c)),
    }
    e_in, kidx = e, 7
    for _ in range(layers):
        wih_f = u(keys[kidx + 0], (e_in, h))    # W_ih forward  (pre-transposed)
        whh_f = u(keys[kidx + 1], (h, h))       # W_hh forward
        b_f = u(keys[kidx + 2], (1, h))         # b_ih + b_hh forward (combined)
        wih_b = u(keys[kidx + 3], (e_in, h))    # W_ih backward
        whh_b = u(keys[kidx + 4], (h, h))       # W_hh backward
        b_b = u(keys[kidx + 5], (1, h))         # bias backward (combined)
        params["rnn"].append((
            jnp.concatenate([wih_f, wih_b], axis=1),   # (E_in, 2H)
            whh_f, whh_b,
            jnp.concatenate([b_f, b_b], axis=1),       # (1, 2H)
        ))
        e_in = 2 * h
        kidx += 6
    return params


if __name__ == "__main__":
    VOCAB, E, H, C = 50, 32, 32, 3
    tol = 1e-4 if MATMUL_DTYPE == jnp.float32 else 2e-2

    # ---- case 1: tiny T (fully-unrolled recurrence), single layer -----------
    B, T, LAYERS = 2, 8, 1
    params = make_params(jax.random.PRNGKey(0), VOCAB, E, H, C, LAYERS)
    text = jax.random.randint(jax.random.PRNGKey(42), (B, T), 0, VOCAB,
                              dtype=jnp.int32)
    text_len = jnp.array([8, 5], dtype=jnp.int32)   # sorted desc (pack_padded)
    fwd = jax.jit(functools.partial(rnn_forward, layers=LAYERS, hidden=H))
    out = jax.block_until_ready(fwd(text, text_len, params))
    ref = ref_forward(text, text_len, params, layers=LAYERS, hidden=H)
    assert out.shape == (B, C)
    assert jnp.allclose(out, ref, atol=tol, rtol=tol), (out, ref)

    # ---- case 2: longer T (fori_loop recurrence), 2 layers, odd batch -------
    B2, T2, LAYERS2 = 3, 40, 2
    params2 = make_params(jax.random.PRNGKey(1), VOCAB, E, H, C, LAYERS2)
    text2 = jax.random.randint(jax.random.PRNGKey(7), (B2, T2), 0, VOCAB,
                               dtype=jnp.int32)
    text_len2 = jnp.array([40, 23, 7], dtype=jnp.int32)
    fwd2 = jax.jit(functools.partial(rnn_forward, layers=LAYERS2, hidden=H))
    out2 = jax.block_until_ready(fwd2(text2, text_len2, params2))
    ref2 = ref_forward(text2, text_len2, params2, layers=LAYERS2, hidden=H)
    assert out2.shape == (B2, C)
    assert jnp.allclose(out2, ref2, atol=tol, rtol=tol), (out2, ref2)

    print("KERNEL_OK")
</pallas_src>

<mosaic_0001>
module attributes {stable_mosaic.version = 11 : i64} {
  func.func @_rnn_bidir_head_kernel(%arg0: memref<8x8x32xf32, #tpu.memory_space<vmem>>, %arg1: memref<8x8x1xf32, #tpu.memory_space<vmem>>, %arg2: memref<32x64xf32, #tpu.memory_space<vmem>>, %arg3: memref<64x64xf32, #tpu.memory_space<vmem>>, %arg4: memref<1x64xf32, #tpu.memory_space<vmem>>, %arg5: memref<64x64xf32, #tpu.memory_space<vmem>>, %arg6: memref<1x64xf32, #tpu.memory_space<vmem>>, %arg7: memref<64x32xf32, #tpu.memory_space<vmem>>, %arg8: memref<1x32xf32, #tpu.memory_space<vmem>>, %arg9: memref<32x3xf32, #tpu.memory_space<vmem>>, %arg10: memref<1x3xf32, #tpu.memory_space<vmem>>, %arg11: memref<8x3xf32, #tpu.memory_space<vmem>>, %arg12: memref<8x8x64xf32, #tpu.memory_space<vmem>>) attributes {dimension_semantics = [], scalar_prefetch = 0 : i64, scratch_operands = 1 : i64, tpu.core_type = #tpu.core_type<tc>} {
    %c0 = arith.constant 0 : index
    %c0_0 = arith.constant 0 : index
    %c0_1 = arith.constant 0 : index
    %0 = vector.load %arg0[%c0, %c0_0, %c0_1] : memref<8x8x32xf32, #tpu.memory_space<vmem>>, vector<8x8x32xf32>
    %1 = vector.shape_cast %0 : vector<8x8x32xf32> to vector<64x32xf32>
    %c0_2 = arith.constant 0 : index
    %c0_3 = arith.constant 0 : index
    %2 = vector.load %arg2[%c0_2, %c0_3] : memref<32x64xf32, #tpu.memory_space<vmem>>, vector<32x64xf32>
    %cst = arith.constant dense<0.000000e+00> : vector<64x64xf32>
    %3 = tpu.matmul %1, %2, %cst {dimension_numbers = #tpu.dot_dimension_numbers<[1], [0], [0], [1], [0, 0, 1, 1], [], []>} : vector<64x32xf32>, vector<32x64xf32>, vector<64x64xf32> -> vector<64x64xf32>
    %c0_4 = arith.constant 0 : index
    %c0_5 = arith.constant 0 : index
    %4 = vector.load %arg4[%c0_4, %c0_5] : memref<1x64xf32, #tpu.memory_space<vmem>>, vector<1x64xf32>
    %5 = vector.broadcast %4 : vector<1x64xf32> to vector<64x64xf32>
    %6 = arith.addf %3, %5 : vector<64x64xf32>
    %7 = vector.shape_cast %6 : vector<64x64xf32> to vector<8x8x64xf32>
    %c0_6 = arith.constant 0 : index
    %c0_7 = arith.constant 0 : index
    %c0_8 = arith.constant 0 : index
    %8 = vector.load %arg12[%c0_6, %c0_7, %c0_8] : memref<8x8x64xf32, #tpu.memory_space<vmem>>, vector<8x8x64xf32>
    tpu.vector_store %arg12[%c0_6, %c0_7, %c0_8], %7 {strides = array<i32>} : memref<8x8x64xf32, #tpu.memory_space<vmem>>, vector<8x8x64xf32>,
    %c0_9 = arith.constant 0 : index
    %c0_10 = arith.constant 0 : index
    %9 = vector.load %arg3[%c0_9, %c0_10] : memref<64x64xf32, #tpu.memory_space<vmem>>, vector<64x64xf32>
    %10 = tpu.iota {dimensions = array<i32: 1>} : vector<8x64xi32>
    %c32_i32 = arith.constant 32 : i32
    %11 = vector.broadcast %c32_i32 : i32 to vector<8x64xi32>
    %12 = arith.cmpi slt, %10, %11 : vector<8x64xi32>
    %cst_11 = arith.constant 0.000000e+00 : f32
    %13 = vector.broadcast %cst_11 : f32 to vector<8x64xf32>
    %c0_12 = arith.constant 0 : index
    %c0_13 = arith.constant 0 : index
    %c0_14 = arith.constant 0 : index
    %14 = vector.load %arg12[%c0_12, %c0_13, %c0_14] : memref<8x8x64xf32, #tpu.memory_space<vmem>>, vector<1x8x64xf32>
    %15 = vector.shape_cast %14 : vector<1x8x64xf32> to vector<8x64xf32>
    %c7 = arith.constant 7 : index
    %c0_15 = arith.constant 0 : index
    %c0_16 = arith.constant 0 : index
    %16 = vector.load %arg12[%c7, %c0_15, %c0_16] : memref<8x8x64xf32, #tpu.memory_space<vmem>>, vector<1x8x64xf32>
    %17 = vector.shape_cast %16 : vector<1x8x64xf32> to vector<8x64xf32>
    %18 = arith.select %12, %15, %17 : vector<8x64xi1>, vector<8x64xf32>
    %c0_17 = arith.constant 0 : index
    %c0_18 = arith.constant 0 : index
    %c0_19 = arith.constant 0 : index
    %19 = vector.load %arg1[%c0_17, %c0_18, %c0_19] : memref<8x8x1xf32, #tpu.memory_space<vmem>>, vector<1x8x1xf32>
    %20 = vector.shape_cast %19 : vector<1x8x1xf32> to vector<8x1xf32>
    %c7_20 = arith.constant 7 : index
    %c0_21 = arith.constant 0 : index
    %c0_22 = arith.constant 0 : index
    %21 = vector.load %arg1[%c7_20, %c0_21, %c0_22] : memref<8x8x1xf32, #tpu.memory_space<vmem>>, vector<1x8x1xf32>
    %22 = vector.shape_cast %21 : vector<1x8x1xf32> to vector<8x1xf32>
    %23 = vector.shape_cast %20 : vector<8x1xf32> to vector<8x1xf32>
    %24 = vector.broadcast %23 : vector<8x1xf32> to vector<8x64xf32>
    %25 = vector.shape_cast %22 : vector<8x1xf32> to vector<8x1xf32>
    %26 = vector.broadcast %25 : vector<8x1xf32> to vector<8x64xf32>
    %27 = arith.select %12, %24, %26 : vector<8x64xi1>, vector<8x64xf32>
    %cst_23 = arith.constant dense<0.000000e+00> : vector<8x64xf32>
    %28 = tpu.matmul %13, %9, %cst_23 {dimension_numbers = #tpu.dot_dimension_numbers<[1], [0], [0], [1], [0, 0, 1, 1], [], []>} : vector<8x64xf32>, vector<64x64xf32>, vector<8x64xf32> -> vector<8x64xf32>
    %29 = arith.addf %18, %28 : vector<8x64xf32>
    %30 = math.tanh %29 : vector<8x64xf32>
    %cst_24 = arith.constant 0.000000e+00 : f32
    %31 = vector.broadcast %cst_24 : f32 to vector<8x64xf32>
    %32 = arith.cmpf ogt, %27, %31 : vector<8x64xf32>
    %33 = arith.select %32, %30, %13 : vector<8x64xi1>, vector<8x64xf32>
    %c1 = arith.constant 1 : index
    %c0_25 = arith.constant 0 : index
    %c0_26 = arith.constant 0 : index
    %34 = vector.load %arg12[%c1, %c0_25, %c0_26] : memref<8x8x64xf32, #tpu.memory_space<vmem>>, vector<1x8x64xf32>
    %35 = vector.shape_cast %34 : vector<1x8x64xf32> to vector<8x64xf32>
    %c6 = arith.constant 6 : index
    %c0_27 = arith.constant 0 : index
    %c0_28 = arith.constant 0 : index
    %36 = vector.load %arg12[%c6, %c0_27, %c0_28] : memref<8x8x64xf32, #tpu.memory_space<vmem>>, vector<1x8x64xf32>
    %37 = vector.shape_cast %36 : vector<1x8x64xf32> to vector<8x64xf32>
    %38 = arith.select %12, %35, %37 : vector<8x64xi1>, vector<8x64xf32>
    %c1_29 = arith.constant 1 : index
    %c0_30 = arith.constant 0 : index
    %c0_31 = arith.constant 0 : index
    %39 = vector.load %arg1[%c1_29, %c0_30, %c0_31] : memref<8x8x1xf32, #tpu.memory_space<vmem>>, vector<1x8x1xf32>
    %40 = vector.shape_cast %39 : vector<1x8x1xf32> to vector<8x1xf32>
    %c6_32 = arith.constant 6 : index
    %c0_33 = arith.constant 0 : index
    %c0_34 = arith.constant 0 : index
    %41 = vector.load %arg1[%c6_32, %c0_33, %c0_34] : memref<8x8x1xf32, #tpu.memory_space<vmem>>, vector<1x8x1xf32>
    %42 = vector.shape_cast %41 : vector<1x8x1xf32> to vector<8x1xf32>
    %43 = vector.shape_cast %40 : vector<8x1xf32> to vector<8x1xf32>
    %44 = vector.broadcast %43 : vector<8x1xf32> to vector<8x64xf32>
    %45 = vector.shape_cast %42 : vector<8x1xf32> to vector<8x1xf32>
    %46 = vector.broadcast %45 : vector<8x1xf32> to vector<8x64xf32>
    %47 = arith.select %12, %44, %46 : vector<8x64xi1>, vector<8x64xf32>
    %cst_35 = arith.constant dense<0.000000e+00> : vector<8x64xf32>
    %48 = tpu.matmul %33, %9, %cst_35 {dimension_numbers = #tpu.dot_dimension_numbers<[1], [0], [0], [1], [0, 0, 1, 1], [], []>} : vector<8x64xf32>, vector<64x64xf32>, vector<8x64xf32> -> vector<8x64xf32>
    %49 = arith.addf %38, %48 : vector<8x64xf32>
    %50 = math.tanh %49 : vector<8x64xf32>
    %cst_36 = arith.constant 0.000000e+00 : f32
    %51 = vector.broadcast %cst_36 : f32 to vector<8x64xf32>
    %52 = arith.cmpf ogt, %47, %51 : vector<8x64xf32>
    %53 = arith.select %52, %50, %33 : vector<8x64xi1>, vector<8x64xf32>
    %c2 = arith.constant 2 : index
    %c0_37 = arith.constant 0 : index
    %c0_38 = arith.constant 0 : index
    %54 = vector.load %arg12[%c2, %c0_37, %c0_38] : memref<8x8x64xf32, #tpu.memory_space<vmem>>, vector<1x8x64xf32>
    %55 = vector.shape_cast %54 : vector<1x8x64xf32> to vector<8x64xf32>
    %c5 = arith.constant 5 : index
    %c0_39 = arith.constant 0 : index
    %c0_40 = arith.constant 0 : index
    %56 = vector.load %arg12[%c5, %c0_39, %c0_40] : memref<8x8x64xf32, #tpu.memory_space<vmem>>, vector<1x8x64xf32>
    %57 = vector.shape_cast %56 : vector<1x8x64xf32> to vector<8x64xf32>
    %58 = arith.select %12, %55, %57 : vector<8x64xi1>, vector<8x64xf32>
    %c2_41 = arith.constant 2 : index
    %c0_42 = arith.constant 0 : index
    %c0_43 = arith.constant 0 : index
    %59 = vector.load %arg1[%c2_41, %c0_42, %c0_43] : memref<8x8x1xf32, #tpu.memory_space<vmem>>, vector<1x8x1xf32>
    %60 = vector.shape_cast %59 : vector<1x8x1xf32> to vector<8x1xf32>
    %c5_44 = arith.constant 5 : index
    %c0_45 = arith.constant 0 : index
    %c0_46 = arith.constant 0 : index
    %61 = vector.load %arg1[%c5_44, %c0_45, %c0_46] : memref<8x8x1xf32, #tpu.memory_space<vmem>>, vector<1x8x1xf32>
    %62 = vector.shape_cast %61 : vector<1x8x1xf32> to vector<8x1xf32>
    %63 = vector.shape_cast %60 : vector<8x1xf32> to vector<8x1xf32>
    %64 = vector.broadcast %63 : vector<8x1xf32> to vector<8x64xf32>
    %65 = vector.shape_cast %62 : vector<8x1xf32> to vector<8x1xf32>
    %66 = vector.broadcast %65 : vector<8x1xf32> to vector<8x64xf32>
    %67 = arith.select %12, %64, %66 : vector<8x64xi1>, vector<8x64xf32>
    %cst_47 = arith.constant dense<0.000000e+00> : vector<8x64xf32>
    %68 = tpu.matmul %53, %9, %cst_47 {dimension_numbers = #tpu.dot_dimension_numbers<[1], [0], [0], [1], [0, 0, 1, 1], [], []>} : vector<8x64xf32>, vector<64x64xf32>, vector<8x64xf32> -> vector<8x64xf32>
    %69 = arith.addf %58, %68 : vector<8x64xf32>
    %70 = math.tanh %69 : vector<8x64xf32>
    %cst_48 = arith.constant 0.000000e+00 : f32
    %71 = vector.broadcast %cst_48 : f32 to vector<8x64xf32>
    %72 = arith.cmpf ogt, %67, %71 : vector<8x64xf32>
    %73 = arith.select %72, %70, %53 : vector<8x64xi1>, vector<8x64xf32>
    %c3 = arith.constant 3 : index
    %c0_49 = arith.constant 0 : index
    %c0_50 = arith.constant 0 : index
    %74 = vector.load %arg12[%c3, %c0_49, %c0_50] : memref<8x8x64xf32, #tpu.memory_space<vmem>>, vector<1x8x64xf32>
    %75 = vector.shape_cast %74 : vector<1x8x64xf32> to vector<8x64xf32>
    %c4 = arith.constant 4 : index
    %c0_51 = arith.constant 0 : index
    %c0_52 = arith.constant 0 : index
    %76 = vector.load %arg12[%c4, %c0_51, %c0_52] : memref<8x8x64xf32, #tpu.memory_space<vmem>>, vector<1x8x64xf32>
    %77 = vector.shape_cast %76 : vector<1x8x64xf32> to vector<8x64xf32>
    %78 = arith.select %12, %75, %77 : vector<8x64xi1>, vector<8x64xf32>
    %c3_53 = arith.constant 3 : index
    %c0_54 = arith.constant 0 : index
    %c0_55 = arith.constant 0 : index
    %79 = vector.load %arg1[%c3_53, %c0_54, %c0_55] : memref<8x8x1xf32, #tpu.memory_space<vmem>>, vector<1x8x1xf32>
    %80 = vector.shape_cast %79 : vector<1x8x1xf32> to vector<8x1xf32>
    %c4_56 = arith.constant 4 : index
    %c0_57 = arith.constant 0 : index
    %c0_58 = arith.constant 0 : index
    %81 = vector.load %arg1[%c4_56, %c0_57, %c0_58] : memref<8x8x1xf32, #tpu.memory_space<vmem>>, vector<1x8x1xf32>
    %82 = vector.shape_cast %81 : vector<1x8x1xf32> to vector<8x1xf32>
    %83 = vector.shape_cast %80 : vector<8x1xf32> to vector<8x1xf32>
    %84 = vector.broadcast %83 : vector<8x1xf32> to vector<8x64xf32>
    %85 = vector.shape_cast %82 : vector<8x1xf32> to vector<8x1xf32>
    %86 = vector.broadcast %85 : vector<8x1xf32> to vector<8x64xf32>
    %87 = arith.select %12, %84, %86 : vector<8x64xi1>, vector<8x64xf32>
    %cst_59 = arith.constant dense<0.000000e+00> : vector<8x64xf32>
    %88 = tpu.matmul %73, %9, %cst_59 {dimension_numbers = #tpu.dot_dimension_numbers<[1], [0], [0], [1], [0, 0, 1, 1], [], []>} : vector<8x64xf32>, vector<64x64xf32>, vector<8x64xf32> -> vector<8x64xf32>
    %89 = arith.addf %78, %88 : vector<8x64xf32>
    %90 = math.tanh %89 : vector<8x64xf32>
    %cst_60 = arith.constant 0.000000e+00 : f32
    %91 = vector.broadcast %cst_60 : f32 to vector<8x64xf32>
    %92 = arith.cmpf ogt, %87, %91 : vector<8x64xf32>
    %93 = arith.select %92, %90, %73 : vector<8x64xi1>, vector<8x64xf32>
    %c4_61 = arith.constant 4 : index
    %c0_62 = arith.constant 0 : index
    %c0_63 = arith.constant 0 : index
    %94 = vector.load %arg12[%c4_61, %c0_62, %c0_63] : memref<8x8x64xf32, #tpu.memory_space<vmem>>, vector<1x8x64xf32>
    %95 = vector.shape_cast %94 : vector<1x8x64xf32> to vector<8x64xf32>
    %c3_64 = arith.constant 3 : index
    %c0_65 = arith.constant 0 : index
    %c0_66 = arith.constant 0 : index
    %96 = vector.load %arg12[%c3_64, %c0_65, %c0_66] : memref<8x8x64xf32, #tpu.memory_space<vmem>>, vector<1x8x64xf32>
    %97 = vector.shape_cast %96 : vector<1x8x64xf32> to vector<8x64xf32>
    %98 = arith.select %12, %95, %97 : vector<8x64xi1>, vector<8x64xf32>
    %c4_67 = arith.constant 4 : index
    %c0_68 = arith.constant 0 : index
    %c0_69 = arith.constant 0 : index
    %99 = vector.load %arg1[%c4_67, %c0_68, %c0_69] : memref<8x8x1xf32, #tpu.memory_space<vmem>>, vector<1x8x1xf32>
    %100 = vector.shape_cast %99 : vector<1x8x1xf32> to vector<8x1xf32>
    %c3_70 = arith.constant 3 : index
    %c0_71 = arith.constant 0 : index
    %c0_72 = arith.constant 0 : index
    %101 = vector.load %arg1[%c3_70, %c0_71, %c0_72] : memref<8x8x1xf32, #tpu.memory_space<vmem>>, vector<1x8x1xf32>
    %102 = vector.shape_cast %101 : vector<1x8x1xf32> to vector<8x1xf32>
    %103 = vector.shape_cast %100 : vector<8x1xf32> to vector<8x1xf32>
    %104 = vector.broadcast %103 : vector<8x1xf32> to vector<8x64xf32>
    %105 = vector.shape_cast %102 : vector<8x1xf32> to vector<8x1xf32>
    %106 = vector.broadcast %105 : vector<8x1xf32> to vector<8x64xf32>
    %107 = arith.select %12, %104, %106 : vector<8x64xi1>, vector<8x64xf32>
    %cst_73 = arith.constant dense<0.000000e+00> : vector<8x64xf32>
    %108 = tpu.matmul %93, %9, %cst_73 {dimension_numbers = #tpu.dot_dimension_numbers<[1], [0], [0], [1], [0, 0, 1, 1], [], []>} : vector<8x64xf32>, vector<64x64xf32>, vector<8x64xf32> -> vector<8x64xf32>
    %109 = arith.addf %98, %108 : vector<8x64xf32>
    %110 = math.tanh %109 : vector<8x64xf32>
    %cst_74 = arith.constant 0.000000e+00 : f32
    %111 = vector.broadcast %cst_74 : f32 to vector<8x64xf32>
    %112 = arith.cmpf ogt, %107, %111 : vector<8x64xf32>
    %113 = arith.select %112, %110, %93 : vector<8x64xi1>, vector<8x64xf32>
    %c5_75 = arith.constant 5 : index
    %c0_76 = arith.constant 0 : index
    %c0_77 = arith.constant 0 : index
    %114 = vector.load %arg12[%c5_75, %c0_76, %c0_77] : memref<8x8x64xf32, #tpu.memory_space<vmem>>, vector<1x8x64xf32>
    %115 = vector.shape_cast %114 : vector<1x8x64xf32> to vector<8x64xf32>
    %c2_78 = arith.constant 2 : index
    %c0_79 = arith.constant 0 : index
    %c0_80 = arith.constant 0 : index
    %116 = vector.load %arg12[%c2_78, %c0_79, %c0_80] : memref<8x8x64xf32, #tpu.memory_space<vmem>>, vector<1x8x64xf32>
    %117 = vector.shape_cast %116 : vector<1x8x64xf32> to vector<8x64xf32>
    %118 = arith.select %12, %115, %117 : vector<8x64xi1>, vector<8x64xf32>
    %c5_81 = arith.constant 5 : index
    %c0_82 = arith.constant 0 : index
    %c0_83 = arith.constant 0 : index
    %119 = vector.load %arg1[%c5_81, %c0_82, %c0_83] : memref<8x8x1xf32, #tpu.memory_space<vmem>>, vector<1x8x1xf32>
    %120 = vector.shape_cast %119 : vector<1x8x1xf32> to vector<8x1xf32>
    %c2_84 = arith.constant 2 : index
    %c0_85 = arith.constant 0 : index
    %c0_86 = arith.constant 0 : index
    %121 = vector.load %arg1[%c2_84, %c0_85, %c0_86] : memref<8x8x1xf32, #tpu.memory_space<vmem>>, vector<1x8x1xf32>
    %122 = vector.shape_cast %121 : vector<1x8x1xf32> to vector<8x1xf32>
    %123 = vector.shape_cast %120 : vector<8x1xf32> to vector<8x1xf32>
    %124 = vector.broadcast %123 : vector<8x1xf32> to vector<8x64xf32>
    %125 = vector.shape_cast %122 : vector<8x1xf32> to vector<8x1xf32>
    %126 = vector.broadcast %125 : vector<8x1xf32> to vector<8x64xf32>
    %127 = arith.select %12, %124, %126 : vector<8x64xi1>, vector<8x64xf32>
    %cst_87 = arith.constant dense<0.000000e+00> : vector<8x64xf32>
    %128 = tpu.matmul %113, %9, %cst_87 {dimension_numbers = #tpu.dot_dimension_numbers<[1], [0], [0], [1], [0, 0, 1, 1], [], []>} : vector<8x64xf32>, vector<64x64xf32>, vector<8x64xf32> -> vector<8x64xf32>
    %129 = arith.addf %118, %128 : vector<8x64xf32>
    %130 = math.tanh %129 : vector<8x64xf32>
    %cst_88 = arith.constant 0.000000e+00 : f32
    %131 = vector.broadcast %cst_88 : f32 to vector<8x64xf32>
    %132 = arith.cmpf ogt, %127, %131 : vector<8x64xf32>
    %133 = arith.select %132, %130, %113 : vector<8x64xi1>, vector<8x64xf32>
    %c6_89 = arith.constant 6 : index
    %c0_90 = arith.constant 0 : index
    %c0_91 = arith.constant 0 : index
    %134 = vector.load %arg12[%c6_89, %c0_90, %c0_91] : memref<8x8x64xf32, #tpu.memory_space<vmem>>, vector<1x8x64xf32>
    %135 = vector.shape_cast %134 : vector<1x8x64xf32> to vector<8x64xf32>
    %c1_92 = arith.constant 1 : index
    %c0_93 = arith.constant 0 : index
    %c0_94 = arith.constant 0 : index
    %136 = vector.load %arg12[%c1_92, %c0_93, %c0_94] : memref<8x8x64xf32, #tpu.memory_space<vmem>>, vector<1x8x64xf32>
    %137 = vector.shape_cast %136 : vector<1x8x64xf32> to vector<8x64xf32>
    %138 = arith.select %12, %135, %137 : vector<8x64xi1>, vector<8x64xf32>
    %c6_95 = arith.constant 6 : index
    %c0_96 = arith.constant 0 : index
    %c0_97 = arith.constant 0 : index
    %139 = vector.load %arg1[%c6_95, %c0_96, %c0_97] : memref<8x8x1xf32, #tpu.memory_space<vmem>>, vector<1x8x1xf32>
    %140 = vector.shape_cast %139 : vector<1x8x1xf32> to vector<8x1xf32>
    %c1_98 = arith.constant 1 : index
    %c0_99 = arith.constant 0 : index
    %c0_100 = arith.constant 0 : index
    %141 = vector.load %arg1[%c1_98, %c0_99, %c0_100] : memref<8x8x1xf32, #tpu.memory_space<vmem>>, vector<1x8x1xf32>
    %142 = vector.shape_cast %141 : vector<1x8x1xf32> to vector<8x1xf32>
    %143 = vector.shape_cast %140 : vector<8x1xf32> to vector<8x1xf32>
    %144 = vector.broadcast %143 : vector<8x1xf32> to vector<8x64xf32>
    %145 = vector.shape_cast %142 : vector<8x1xf32> to vector<8x1xf32>
    %146 = vector.broadcast %145 : vector<8x1xf32> to vector<8x64xf32>
    %147 = arith.select %12, %144, %146 : vector<8x64xi1>, vector<8x64xf32>
    %cst_101 = arith.constant dense<0.000000e+00> : vector<8x64xf32>
    %148 = tpu.matmul %133, %9, %cst_101 {dimension_numbers = #tpu.dot_dimension_numbers<[1], [0], [0], [1], [0, 0, 1, 1], [], []>} : vector<8x64xf32>, vector<64x64xf32>, vector<8x64xf32> -> vector<8x64xf32>
    %149 = arith.addf %138, %148 : vector<8x64xf32>
    %150 = math.tanh %149 : vector<8x64xf32>
    %cst_102 = arith.constant 0.000000e+00 : f32
    %151 = vector.broadcast %cst_102 : f32 to vector<8x64xf32>
    %152 = arith.cmpf ogt, %147, %151 : vector<8x64xf32>
    %153 = arith.select %152, %150, %133 : vector<8x64xi1>, vector<8x64xf32>
    %c7_103 = arith.constant 7 : index
    %c0_104 = arith.constant 0 : index
    %c0_105 = arith.constant 0 : index
    %154 = vector.load %arg12[%c7_103, %c0_104, %c0_105] : memref<8x8x64xf32, #tpu.memory_space<vmem>>, vector<1x8x64xf32>
    %155 = vector.shape_cast %154 : vector<1x8x64xf32> to vector<8x64xf32>
    %c0_106 = arith.constant 0 : index
    %c0_107 = arith.constant 0 : index
    %c0_108 = arith.constant 0 : index
    %156 = vector.load %arg12[%c0_106, %c0_107, %c0_108] : memref<8x8x64xf32, #tpu.memory_space<vmem>>, vector<1x8x64xf32>
    %157 = vector.shape_cast %156 : vector<1x8x64xf32> to vector<8x64xf32>
    %158 = arith.select %12, %155, %157 : vector<8x64xi1>, vector<8x64xf32>
    %c7_109 = arith.constant 7 : index
    %c0_110 = arith.constant 0 : index
    %c0_111 = arith.constant 0 : index
    %159 = vector.load %arg1[%c7_109, %c0_110, %c0_111] : memref<8x8x1xf32, #tpu.memory_space<vmem>>, vector<1x8x1xf32>
    %160 = vector.shape_cast %159 : vector<1x8x1xf32> to vector<8x1xf32>
    %c0_112 = arith.constant 0 : index
    %c0_113 = arith.constant 0 : index
    %c0_114 = arith.constant 0 : index
    %161 = vector.load %arg1[%c0_112, %c0_113, %c0_114] : memref<8x8x1xf32, #tpu.memory_space<vmem>>, vector<1x8x1xf32>
    %162 = vector.shape_cast %161 : vector<1x8x1xf32> to vector<8x1xf32>
    %163 = vector.shape_cast %160 : vector<8x1xf32> to vector<8x1xf32>
    %164 = vector.broadcast %163 : vector<8x1xf32> to vector<8x64xf32>
    %165 = vector.shape_cast %162 : vector<8x1xf32> to vector<8x1xf32>
    %166 = vector.broadcast %165 : vector<8x1xf32> to vector<8x64xf32>
    %167 = arith.select %12, %164, %166 : vector<8x64xi1>, vector<8x64xf32>
    %cst_115 = arith.constant dense<0.000000e+00> : vector<8x64xf32>
    %168 = tpu.matmul %153, %9, %cst_115 {dimension_numbers = #tpu.dot_dimension_numbers<[1], [0], [0], [1], [0, 0, 1, 1], [], []>} : vector<8x64xf32>, vector<64x64xf32>, vector<8x64xf32> -> vector<8x64xf32>
    %169 = arith.addf %158, %168 : vector<8x64xf32>
    %170 = math.tanh %169 : vector<8x64xf32>
    %cst_116 = arith.constant 0.000000e+00 : f32
    %171 = vector.broadcast %cst_116 : f32 to vector<8x64xf32>
    %172 = arith.cmpf ogt, %167, %171 : vector<8x64xf32>
    %173 = arith.select %172, %170, %153 : vector<8x64xi1>, vector<8x64xf32>
    %c0_117 = arith.constant 0 : index
    %c0_118 = arith.constant 0 : index
    %174 = vector.load %arg5[%c0_117, %c0_118] : memref<64x64xf32, #tpu.memory_space<vmem>>, vector<64x64xf32>
    %cst_119 = arith.constant dense<0.000000e+00> : vector<8x64xf32>
    %175 = tpu.matmul %173, %174, %cst_119 {dimension_numbers = #tpu.dot_dimension_numbers<[1], [0], [0], [1], [0, 0, 1, 1], [], []>} : vector<8x64xf32>, vector<64x64xf32>, vector<8x64xf32> -> vector<8x64xf32>
    %c0_120 = arith.constant 0 : index
    %c0_121 = arith.constant 0 : index
    %176 = vector.load %arg6[%c0_120, %c0_121] : memref<1x64xf32, #tpu.memory_space<vmem>>, vector<1x64xf32>
    %177 = vector.broadcast %176 : vector<1x64xf32> to vector<8x64xf32>
    %178 = arith.addf %175, %177 : vector<8x64xf32>
    %cst_122 = arith.constant 0.000000e+00 : f32
    %179 = vector.broadcast %cst_122 : f32 to vector<8x64xf32>
    %180 = arith.maximumf %178, %179 : vector<8x64xf32>
    %c0_123 = arith.constant 0 : index
    %c0_124 = arith.constant 0 : index
    %181 = vector.load %arg7[%c0_123, %c0_124] : memref<64x32xf32, #tpu.memory_space<vmem>>, vector<64x32xf32>
    %cst_125 = arith.constant dense<0.000000e+00> : vector<8x32xf32>
    %182 = tpu.matmul %180, %181, %cst_125 {dimension_numbers = #tpu.dot_dimension_numbers<[1], [0], [0], [1], [0, 0, 1, 1], [], []>} : vector<8x64xf32>, vector<64x32xf32>, vector<8x32xf32> -> vector<8x32xf32>
    %c0_126 = arith.constant 0 : index
    %c0_127 = arith.constant 0 : index
    %183 = vector.load %arg8[%c0_126, %c0_127] : memref<1x32xf32, #tpu.memory_space<vmem>>, vector<1x32xf32>
    %184 = vector.broadcast %183 : vector<1x32xf32> to vector<8x32xf32>
    %185 = arith.addf %182, %184 : vector<8x32xf32>
    %cst_128 = arith.constant 0.000000e+00 : f32
    %186 = vector.broadcast %cst_128 : f32 to vector<8x32xf32>
    %187 = arith.maximumf %185, %186 : vector<8x32xf32>
    %c0_129 = arith.constant 0 : index
    %c0_130 = arith.constant 0 : index
    %188 = vector.load %arg9[%c0_129, %c0_130] : memref<32x3xf32, #tpu.memory_space<vmem>>, vector<32x3xf32>
    %cst_131 = arith.constant dense<0.000000e+00> : vector<8x3xf32>
    %189 = tpu.matmul %187, %188, %cst_131 {dimension_numbers = #tpu.dot_dimension_numbers<[1], [0], [0], [1], [0, 0, 1, 1], [], []>} : vector<8x32xf32>, vector<32x3xf32>, vector<8x3xf32> -> vector<8x3xf32>
    %c0_132 = arith.constant 0 : index
    %c0_133 = arith.constant 0 : index
    %190 = vector.load %arg10[%c0_132, %c0_133] : memref<1x3xf32, #tpu.memory_space<vmem>>, vector<1x3xf32>
    %191 = vector.broadcast %190 : vector<1x3xf32> to vector<8x3xf32>
    %192 = arith.addf %189, %191 : vector<8x3xf32>
    %193 = arith.negf %192 : vector<8x3xf32>
    %194 = math.exp %193 : vector<8x3xf32>
    %cst_134 = arith.constant 1.000000e+00 : f32
    %195 = vector.broadcast %cst_134 : f32 to vector<8x3xf32>
    %196 = arith.addf %195, %194 : vector<8x3xf32>
    %197 = arith.divf %195, %196 : vector<8x3xf32>
    %c0_135 = arith.constant 0 : index
    %c0_136 = arith.constant 0 : index
    %198 = vector.load %arg11[%c0_135, %c0_136] : memref<8x3xf32, #tpu.memory_space<vmem>>, vector<8x3xf32>
    tpu.vector_store %arg11[%c0_135, %c0_136], %197 {strides = array<i32>} : memref<8x3xf32, #tpu.memory_space<vmem>>, vector<8x3xf32>,
    return
  }
}

</mosaic_0001>

<bundles_post_ra>
// kernel: rnn_forward.1
= control target key start
LH: loop header
LB: loop body
LE: loop exit
PB: predicated region body
PF: predicated region fallthrough
CT: control target
= control target key end

     0   :  { %vm57_vm0 = vcmask 261120   ;;  %v1566_v2 = vmov 0.0   ;;  %vm1567_vm1 = vmmov 0   ;;  %v1568_v4 = vmov 0   ;;  %s2100_s2 = inlined_call_operand.vmem [shape: f32[32,64], index: 2, kind: input, shape index: {}]   ;;  %s2101_s0 = inlined_call_operand.vmem [shape: f32[8,8,32], index: 0, kind: input, shape index: {}]   ;;  %s2102_s3 = inlined_call_operand.vmem [shape: f32[64,64], index: 3, kind: input, shape index: {}]   ;;  %s2103_s1 = inlined_call_operand.vmem [shape: f32[8,8,1], index: 1, kind: input, shape index: {}]   ;;  %s2104_s4 = inlined_call_operand.vmem [shape: f32[1,64], index: 4, kind: input, shape index: {}]   ;;  %s2105_s5 = inlined_call_operand.vmem [shape: f32[64,64], index: 5, kind: input, shape index: {}]   ;;  %s2106_s7 = inlined_call_operand.vmem [shape: f32[64,32], index: 7, kind: input, shape index: {}]   ;;  %s2107_s9 = inlined_call_operand.vmem [shape: f32[32,3], index: 9, kind: input, shape index: {}]   ;;  %s2108_s6 = inlined_call_operand.vmem [shape: f32[1,64], index: 6, kind: input, shape index: {}]   ;;  %s2109_s8 = inlined_call_operand.vmem [shape: f32[1,32], index: 8, kind: input, shape index: {}]   ;;  %s2110_s10 = inlined_call_operand.vmem [shape: f32[1,3], index: 10, kind: input, shape index: {}]   ;;  %s2111_s11 = inlined_call_operand.vmem [shape: f32[8,3], index: 11, kind: output, shape index: {}]  }
   0x1   :  { %v49_v0 = vld [vmem:[%s2100_s2 + $0x18] sm:$0xff]  ;;  %v48_v1 = vld [vmem:[%s2100_s2 + $0x10] sm:$0xff]  ;;  %1340 = vmatprep.subr.mxu1 %v1566_v2  ;;  %1356 = vmatprep.mubr.msk.f32.mxu1 %vm1567_vm1, %v1566_v2  ;;  %v38_v3 = vld [vmem:[%s2101_s0] sm:$0xff]  ;;  %v204_v30 = vlaneseq  ;;  %vm187_vm3 = vcmask 523264   ;;  %vm1177_vm12 = vcmask 23552  }
   0x2   :  { %1320 = vmatprep.subr.mxu0 %v49_v0  ;;  %1545 = vset.pattern.permute.xlu1 %v1568_v4  ;;  %v47_v5 = vld [vmem:[%s2100_s2 + $0x8] sm:$0xff]  ;;  %v1648_v6 = vld [vmem:[%s2102_s3 + $0x38] sm:$0xff]  ;;  %v1654_v7 = vld [vmem:[%s2102_s3 + $0x30] sm:$0xff] }
   0x3   :  { %1321 = vmatpush3.msra.mxu0 %v49_v0  ;;  %1328 = vmatprep.mubr.msk.f32.mxu0 %vm57_vm0, %v38_v3  ;;  %v46_v8 = vld [vmem:[%s2100_s2] sm:$0xff]  ;;  %v1663_v9 = vld [vmem:[%s2102_s3 + $0x28] sm:$0xff]  ;;  %v40_v12 = vld [vmem:[%s2101_s0 + $0x10] sm:$0xff]  ;;  %v1794_v31 = vand.u32 127, %v204_v30 }
   0x4   :  { %1322 = vmatprep.subr.mxu0 %v48_v1  ;;  %1341 = vmatpush3.msra.mxu1 %v1648_v6  ;;  %v39_v10 = vld [vmem:[%s2101_s0 + $0x8] sm:$0xff]  ;;  %v1673_v11 = vld [vmem:[%s2102_s3 + $0x20] sm:$0xff]  ;;  %v1683_v13 = vld [vmem:[%s2102_s3 + $0x18] sm:$0xff] }
   0x5   :  { %1323 = vmatpush3.msra.mxu0 %v48_v1  ;;  %1342 = vmatprep.subr.mxu1 %v1566_v2  ;;  %v1193_v14 = vld [vmem:[%s2103_s1 + $0x8] sm:$0xff]  ;;  %v41_v15 = vld [vmem:[%s2101_s0 + $0x18] sm:$0xff]  ;;  %v1698_v16 = vld [vmem:[%s2102_s3 + $0x10] sm:$0xff]  ;;  %vm206_vm2 = vcmp.lt.s32.totalorder %v1794_v31, 32 }
   0x6   :  { %1324 = vmatprep.subr.mxu0 %v47_v5  ;;  %1343 = vmatpush3.msra.mxu1 %v1654_v7  ;;  %v42_v17 = vld [vmem:[%s2101_s0 + $0x20] sm:$0xff]  ;;  %v1708_v18 = vld [vmem:[%s2102_s3 + $0x8] sm:$0xff]  ;;  %v1194_v20 = vld [vmem:[%s2103_s1 + $0x30] sm:$0xff] }
   0x7   :  { %1325 = vmatpush3.msra.mxu0 %v47_v5  ;;  %1344 = vmatprep.subr.mxu1 %v1566_v2  ;;  %v211_v19 = vld [vmem:[%s2103_s1] sm:$0xff]  ;;  %v43_v21 = vld [vmem:[%s2101_s0 + $0x28] sm:$0xff]  ;;  %v44_v23 = vld [vmem:[%s2101_s0 + $0x30] sm:$0xff] }
   0x8   :  { %1326 = vmatprep.subr.mxu0 %v46_v8  ;;  %1345 = vmatpush3.msra.mxu1 %v1663_v9  ;;  %v1726_v22 = vld [vmem:[%s2102_s3] sm:$0xff]  ;;  %v1192_v24 = vld [vmem:[%s2103_s1 + $0x38] sm:$0xff]  ;;  %v1197_v25 = vld [vmem:[%s2103_s1 + $0x28] sm:$0xff] }
   0x9   :  { %1327 = vmatpush3.msra.mxu0 %v46_v8  ;;  %1346 = vmatprep.subr.mxu1 %v1566_v2  ;;  %v45_v26 = vld [vmem:[%s2101_s0 + $0x38] sm:$0xff]  ;;  %v1196_v27 = vld [vmem:[%s2103_s1 + $0x10] sm:$0xff]  ;;  %v1200_v28 = vld [vmem:[%s2103_s1 + $0x20] sm:$0xff] }
   0xa   :  { %1329 = vmatmul.mubr.msk.f32.vlgmr.msra.gmra.mxu0 %vm57_vm0, %v39_v10  ;;  %1347 = vmatpush3.msra.mxu1 %v1673_v11  ;;  %v1199_v29 = vld [vmem:[%s2103_s1 + $0x18] sm:$0xff]  ;;  %v1183_v44 = vld [vmem:[%s2104_s4] ss:$0 sm:$0xff] }
   0xb   :  { %1331 = vmatprep.mubr.msk.f32.mxu0 %vm57_vm0, %v40_v12  ;;  %1348 = vmatprep.subr.mxu1 %v1566_v2 }
   0xc   :  { %1349 = vmatpush3.msra.mxu1 %v1683_v13  ;;  %1544 = vset.pattern.permute.xlu0 %v1568_v4 }
   0xd   :  { %1350 = vmatprep.subr.mxu1 %v1566_v2  ;;  %313 = vperm.xlu1 %1545, %v1193_v14  }
   0xe   :  { %1332 = vmatmul.mubr.msk.f32.gmra.mxu0 %vm57_vm0, %v41_v15  ;;  %1351 = vmatpush3.msra.mxu1 %v1698_v16 }
   0xf   :  { %1334 = vmatprep.mubr.msk.f32.mxu0 %vm57_vm0, %v42_v17  ;;  %1352 = vmatprep.subr.mxu1 %v1566_v2 }
  0x10   :  { %1353 = vmatpush3.msra.mxu1 %v1708_v18  ;;  %216 = vperm.xlu0 %1544, %v211_v19  }
  0x11   :  { %1354 = vmatprep.subr.mxu1 %v1566_v2  ;;  %318 = vperm.xlu1 %1545, %v1194_v20  }
  0x12   :  { %1335 = vmatmul.mubr.msk.f32.gmra.mxu0 %vm57_vm0, %v43_v21  ;;  %1355 = vmatpush3.msra.mxu1 %v1726_v22 }
  0x13   :  { %1337 = vmatprep.mubr.msk.f32.mxu0 %vm57_vm0, %v44_v23  ;;  %1357 = vmatmul.mubr.f32.vlgmr.msra.gmra.mxu1 %v1566_v2 }
  0x14   :  { %221 = vperm.xlu0 %1544, %v1192_v24   ;;  %1359 = vmatprep.subr.mxu0 %v1566_v2 }
  0x15   :  { %415 = vperm.xlu1 %1545, %v1197_v25   ;;  %1360 = vmatpush3.msra.mxu0 %v1648_v6 }
  0x16   :  { %1338 = vmatmul.mubr.msk.f32.gmra.mxu0 %vm57_vm0, %v45_v26  ;;  %1361 = vmatprep.subr.mxu0 %v1566_v2 }
  0x17   :  { %1362 = vmatpush3.msra.mxu0 %v1654_v7  ;;  %1375 = vmatprep.mubr.msk.f32.mxu0 %vm1567_vm1, %v1566_v2 }
  0x18   :  { %410 = vperm.xlu0 %1544, %v1196_v27   ;;  %1363 = vmatprep.subr.mxu0 %v1566_v2 }
  0x19   :  { %512 = vperm.xlu1 %1545, %v1200_v28   ;;  %1364 = vmatpush3.msra.mxu0 %v1663_v9 }
  0x1a   :  { %1365 = vmatprep.subr.mxu0 %v1566_v2  ;;  %1378 = vmatprep.subr.mxu1 %v1566_v2 }
  0x1b   :  { %1366 = vmatpush3.msra.mxu0 %v1673_v11  ;;  %1379 = vmatpush3.msra.mxu1 %v1648_v6 }
  0x1c   :  { %507 = vperm.xlu0 %1544, %v1199_v29   ;;  %1367 = vmatprep.subr.mxu0 %v1566_v2 }
  0x1d   :  { %1368 = vmatpush3.msra.mxu0 %v1683_v13  ;;  %1380 = vmatprep.subr.mxu1 %v1566_v2 }
  0x1e   :  { %1369 = vmatprep.subr.mxu0 %v1566_v2  ;;  %1381 = vmatpush3.msra.mxu1 %v1654_v7 }
  0x1f   :  { %1370 = vmatpush3.msra.mxu0 %v1698_v16  ;;  %1382 = vmatprep.subr.mxu1 %v1566_v2 }
  0x20   :  { %1371 = vmatprep.subr.mxu0 %v1566_v2  ;;  %1383 = vmatpush3.msra.mxu1 %v1663_v9 }
  0x21   :  { %1372 = vmatpush3.msra.mxu0 %v1708_v18  ;;  %1384 = vmatprep.subr.mxu1 %v1566_v2 }
  0x22   :  { %1373 = vmatprep.subr.mxu0 %v1566_v2  ;;  %1385 = vmatpush3.msra.mxu1 %v1673_v11 }
  0x23   :  { %1374 = vmatpush3.msra.mxu0 %v1726_v22  ;;  %1386 = vmatprep.subr.mxu1 %v1566_v2 }
  0x24   :  { %1387 = vmatpush3.msra.mxu1 %v1683_v13  ;;  %1394 = vmatprep.mubr.msk.f32.mxu1 %vm1567_vm1, %v1566_v2 }
  0x25   :  { %1388 = vmatprep.subr.mxu1 %v1566_v2  ;;  %1397 = vmatprep.subr.mxu0 %v1566_v2 }
  0x26   :  { %1389 = vmatpush3.msra.mxu1 %v1698_v16 }
  0x27   :  { %1390 = vmatprep.subr.mxu1 %v1566_v2 }
  0x28   :  { %1391 = vmatpush3.msra.mxu1 %v1708_v18 }
  0x29   :  { %1392 = vmatprep.subr.mxu1 %v1566_v2 }
  0x2a   :  { %1393 = vmatpush3.msra.mxu1 %v1726_v22 }
  0x2b   :  { %1416 = vmatprep.subr.mxu1 %v1566_v2 }
  0x88   :  { %v1796_v32 = vpop.permute.xlu1 %313 }
  0x8b   :  { %v217_v33 = vpop.permute.xlu0 %216 }
  0x8c   :  { %v1799_v34 = vpop.permute.xlu1 %318 }
  0x8d   :  { %v1805_v35 = vsel %vm206_vm2, %v1799_v34, %v1796_v32  ;;  %v321_v29 = vsel %vm206_vm2, %v1796_v32, %v1799_v34 }
  0x8e   :  { %vm397_vm5 = vcmp.gt.f32.partialorder %v321_v29, 0.0  ;;  %vm828_vm10 = vcmp.gt.f32.partialorder %v1805_v35, 0.0  ;;  %v914_v35 = vld [vmem:[%s2105_s5 + $0x28] sm:$0xff] }
  0x8f   :  { %v222_v36 = vpop.permute.xlu0 %221 }
  0x90   :  { %v1809_v37 = vsel %vm206_vm2, %v222_v36, %v217_v33  ;;  %v1811_v38 = vpop.permute.xlu1 %415  ;;  %v224_v21 = vsel %vm206_vm2, %v217_v33, %v222_v36 }
  0x91   :  { %vm300_vm4 = vcmp.gt.f32.partialorder %v224_v21, 0.0  ;;  %vm907_vm11 = vcmp.gt.f32.partialorder %v1809_v37, 0.0  ;;  %v998_v37 = vld [vmem:[%s2106_s7] sm:$0xff] }
  0x93   :  { %v1813_v39 = vpop.permute.xlu0 %410 }
  0x94   :  { %v1819_v40 = vsel %vm206_vm2, %v1811_v38, %v1813_v39  ;;  %v1821_v41 = vpop.permute.xlu1 %512 }
  0x95   :  { %vm749_vm9 = vcmp.gt.f32.partialorder %v1819_v40, 0.0  ;;  %v916_v40 = vld [vmem:[%s2105_s5 + $0x38] sm:$0xff] }
  0x97   :  { %v1823_v42 = vpop.permute.xlu0 %507 }
  0x98   :  { %v1829_v43 = vsel %vm206_vm2, %v1821_v41, %v1823_v42 }
  0x99   :  { %vm670_vm8 = vcmp.gt.f32.partialorder %v1829_v43, 0.0 }
  0xca   :  { %v1330_v45 = vpop.f32.mrf.mxu0 }
  0xcb   :  { %v154_v46 = vadd.f32 %v1330_v45, %v1183_v44  ;;  %v418_v45 = vsel %vm206_vm2, %v1813_v39, %v1811_v38 }
  0xcc   :  { %v148_v47 = vpop.f32.mrf.mxu0  ;;  %vm494_vm6 = vcmp.gt.f32.partialorder %v418_v45, 0.0 }
  0xcd   :  { %189 = vst.msk [vmem:[#allocation2 + $0x8] sm:$0xff] %vm187_vm3, %v154_v46  ;;  %v149_v48 = vadd.f32 %v1183_v44, %v148_v47 }
  0xce   :  { %v1333_v49 = vpop.f32.mrf.mxu0 }
  0xcf   :  { %188 = vst.msk [vmem:[#allocation2] sm:$0xff] %vm187_vm3, %v149_v48  ;;  %v164_v50 = vadd.f32 %v1333_v49, %v1183_v44 }
  0xd0   :  { %v158_v51 = vpop.f32.mrf.mxu0 }
  0xd1   :  { %191 = vst.msk [vmem:[#allocation2 + $0x18] sm:$0xff] %vm187_vm3, %v164_v50  ;;  %v159_v52 = vadd.f32 %v1183_v44, %v158_v51  ;;  %v515_v50 = vsel %vm206_vm2, %v1823_v42, %v1821_v41 }
  0xd2   :  { %v1336_v53 = vpop.f32.mrf.mxu0  ;;  %vm591_vm7 = vcmp.gt.f32.partialorder %v515_v50, 0.0 }
  0xd3   :  { %190 = vst.msk [vmem:[#allocation2 + $0x10] sm:$0xff] %vm187_vm3, %v159_v52  ;;  %v174_v54 = vadd.f32 %v1336_v53, %v1183_v44  ;;  %v294_v55 = vpop.f32.mrf.mxu1 }
  0xd4   :  { %v168_v56 = vpop.f32.mrf.mxu0  ;;  %v303_v17 = vld [vmem:[#allocation2 + $0x8] sm:$0xff] }
  0xd5   :  { %193 = vst.msk [vmem:[#allocation2 + $0x28] sm:$0xff] %vm187_vm3, %v174_v54  ;;  %v169_v57 = vadd.f32 %v1183_v44, %v168_v56  ;;  %v1358_v58 = vpop.f32.mrf.mxu1  ;;  %v915_v56 = vld [vmem:[%s2105_s5 + $0x30] sm:$0xff] }
  0xd6   :  { %v1339_v59 = vpop.f32.mrf.mxu0  ;;  %v207_v8 = vld [vmem:[#allocation2] sm:$0xff]  ;;  %v912_v58 = vld [vmem:[%s2105_s5 + $0x18] sm:$0xff] }
  0xd7   :  { %192 = vst.msk [vmem:[#allocation2 + $0x20] sm:$0xff] %vm187_vm3, %v169_v57  ;;  %v184_v60 = vadd.f32 %v1339_v59, %v1183_v44  ;;  %v913_v57 = vld [vmem:[%s2105_s5 + $0x20] sm:$0xff]  ;;  %v911_v59 = vld [vmem:[%s2105_s5 + $0x10] sm:$0xff] }
  0xd8   :  { %v178_v61 = vpop.f32.mrf.mxu0  ;;  %v1852_v3 = vld [vmem:[#allocation2 + $0x18] sm:$0xff] }
  0xd9   :  { %195 = vst.msk [vmem:[#allocation2 + $0x38] sm:$0xff] %vm187_vm3, %v184_v60  ;;  %v179_v62 = vadd.f32 %v1183_v44, %v178_v61  ;;  %v910_v60 = vld [vmem:[%s2105_s5 + $0x8] sm:$0xff]  ;;  %v909_v61 = vld [vmem:[%s2105_s5] sm:$0xff] }
  0xda   :  { %v1842_v63 = vld [vmem:[#allocation2 + $0x10] sm:$0xff] }
  0xdb   :  { %194 = vst.msk [vmem:[#allocation2 + $0x30] sm:$0xff] %vm187_vm3, %v179_v62  ;;  %v1005_v62 = vld [vmem:[%s2106_s7 + $0x38] sm:$0xff] }
  0xdc   :  { %v1844_v0 = vld [vmem:[#allocation2 + $0x28] sm:$0xff] }
  0xdd   :  { %v1850_v1 = vsel %vm206_vm2, %v1844_v0, %v1842_v63  ;;  %v403_v32 = vsel %vm206_vm2, %v1842_v63, %v1844_v0  ;;  %v1004_v63 = vld [vmem:[%s2106_s7 + $0x30] sm:$0xff]  ;;  %v1003_v0 = vld [vmem:[%s2106_s7 + $0x28] sm:$0xff] }
  0xde   :  { %v1854_v4 = vld [vmem:[#allocation2 + $0x20] sm:$0xff] }
  0xdf   :  { %v1860_v5 = vsel %vm206_vm2, %v1854_v4, %v1852_v3  ;;  %v500_v38 = vsel %vm206_vm2, %v1852_v3, %v1854_v4  ;;  %v1001_v3 = vld [vmem:[%s2106_s7 + $0x18] sm:$0xff] }
  0xe0   :  { %v209_v10 = vld [vmem:[#allocation2 + $0x38] sm:$0xff] }
  0xe1   :  { %v210_v12 = vsel %vm206_vm2, %v207_v8, %v209_v10  ;;  %v1866_v14 = vsel %vm206_vm2, %v209_v10, %v207_v8 }
  0xe2   :  { %v298_v15 = vadd.f32 %v294_v55, %v210_v12  ;;  %v305_v19 = vld [vmem:[#allocation2 + $0x30] sm:$0xff] }
  0xe3   :  { %v1870_v20 = vsel %vm206_vm2, %v305_v19, %v303_v17  ;;  %v306_v25 = vsel %vm206_vm2, %v303_v17, %v305_v19  ;;  %v1090_v17 = vld [vmem:[%s2107_s9 + $0x18] sm:$0xff]  ;;  %v1206_v19 = vld [vmem:[%s2108_s6] ss:$0 sm:$0xff] }
  0xe4   :  { %1546 = vtanh.f32 %v298_v15  ;;  %v1000_v15 = vld [vmem:[%s2106_s7 + $0x10] sm:$0xff] }
  0xf1   :  { %v1547_v23 = vpop.eup %1546 }
  0xf2   :  { %v301_v24 = vsel %vm300_vm4, %v1547_v23, 0.0 }
  0xf3   :  { %1376 = vmatmul.mubr.msk.f32.vlgmr.msra.gmra.mxu0 %vm187_vm3, %v301_v24 }
  0xf4   :  { %1398 = vmatpush3.msra.mxu0 %v1648_v6  ;;  %1413 = vmatprep.mubr.msk.f32.mxu0 %vm1567_vm1, %v1566_v2 }
  0xf5   :  { %1399 = vmatprep.subr.mxu0 %v1566_v2 }
  0xf6   :  { %1400 = vmatpush3.msra.mxu0 %v1654_v7 }
  0xf7   :  { %1401 = vmatprep.subr.mxu0 %v1566_v2 }
  0xf8   :  { %1402 = vmatpush3.msra.mxu0 %v1663_v9 }
  0xf9   :  { %1403 = vmatprep.subr.mxu0 %v1566_v2 }
  0xfa   :  { %1404 = vmatpush3.msra.mxu0 %v1673_v11 }
  0xfb   :  { %1405 = vmatprep.subr.mxu0 %v1566_v2 }
  0xfc   :  { %1406 = vmatpush3.msra.mxu0 %v1683_v13 }
  0xfd   :  { %1407 = vmatprep.subr.mxu0 %v1566_v2 }
  0xfe   :  { %1408 = vmatpush3.msra.mxu0 %v1698_v16 }
  0xff   :  { %1409 = vmatprep.subr.mxu0 %v1566_v2 }
 0x100   :  { %1410 = vmatpush3.msra.mxu0 %v1708_v18 }
 0x101   :  { %1411 = vmatprep.subr.mxu0 %v1566_v2 }
 0x102   :  { %1412 = vmatpush3.msra.mxu0 %v1726_v22 }
 0x103   :  { %1435 = vmatprep.subr.mxu0 %v1566_v2 }
 0x1b3   :  { %v391_v26 = vpop.f32.mrf.mxu0 }
 0x1b4   :  { %v395_v27 = vadd.f32 %v391_v26, %v306_v25  ;;  %v1089_v25 = vld [vmem:[%s2107_s9 + $0x10] sm:$0xff]  ;;  %v1088_v26 = vld [vmem:[%s2107_s9 + $0x8] sm:$0xff] }
 0x1b5   :  { %v1377_v28 = vpop.f32.mrf.mxu0 }
 0x1b6   :  { %1548 = vtanh.f32 %v395_v27  ;;  %v1087_v27 = vld [vmem:[%s2107_s9] sm:$0xff] }
 0x1b7   :  { %v1208_v28 = vld [vmem:[%s2109_s8] ss:$0 sm:$0xff] }
 0x1c3   :  { %v1549_v30 = vpop.eup %1548 }
 0x1c4   :  { %v398_v33 = vsel %vm397_vm5, %v1549_v30, %v301_v24 }
 0x1c5   :  { %1395 = vmatmul.mubr.msk.f32.vlgmr.msra.gmra.mxu1 %vm187_vm3, %v398_v33 }
 0x1c6   :  { %1417 = vmatpush3.msra.mxu1 %v1648_v6  ;;  %1432 = vmatprep.mubr.msk.f32.mxu1 %vm1567_vm1, %v1566_v2 }
 0x1c7   :  { %1418 = vmatprep.subr.mxu1 %v1566_v2 }
 0x1c8   :  { %1419 = vmatpush3.msra.mxu1 %v1654_v7 }
 0x1c9   :  { %1420 = vmatprep.subr.mxu1 %v1566_v2 }
 0x1ca   :  { %1421 = vmatpush3.msra.mxu1 %v1663_v9 }
 0x1cb   :  { %1422 = vmatprep.subr.mxu1 %v1566_v2 }
 0x1cc   :  { %1423 = vmatpush3.msra.mxu1 %v1673_v11 }
 0x1cd   :  { %1424 = vmatprep.subr.mxu1 %v1566_v2 }
 0x1ce   :  { %1425 = vmatpush3.msra.mxu1 %v1683_v13 }
 0x1cf   :  { %1426 = vmatprep.subr.mxu1 %v1566_v2 }
 0x1d0   :  { %1427 = vmatpush3.msra.mxu1 %v1698_v16 }
 0x1d1   :  { %1428 = vmatprep.subr.mxu1 %v1566_v2 }
 0x1d2   :  { %1429 = vmatpush3.msra.mxu1 %v1708_v18 }
 0x1d3   :  { %1430 = vmatprep.subr.mxu1 %v1566_v2 }
 0x1d4   :  { %1431 = vmatpush3.msra.mxu1 %v1726_v22 }
 0x1d5   :  { %1454 = vmatprep.subr.mxu1 %v1566_v2 }
 0x285   :  { %v488_v34 = vpop.f32.mrf.mxu1 }
 0x286   :  { %v492_v36 = vadd.f32 %v488_v34, %v403_v32  ;;  %v1210_v34 = vld [vmem:[%s2110_s10] ss:$0 sm:$0xff] }
 0x287   :  { %v1396_v44 = vpop.f32.mrf.mxu1 }
 0x288   :  { %1550 = vtanh.f32 %v492_v36 }
 0x295   :  { %v1551_v46 = vpop.eup %1550 }
 0x296   :  { %v495_v47 = vsel %vm494_vm6, %v1551_v46, %v398_v33 }
 0x297   :  { %1414 = vmatmul.mubr.msk.f32.vlgmr.msra.gmra.mxu0 %vm187_vm3, %v495_v47 }
 0x298   :  { %1436 = vmatpush3.msra.mxu0 %v1648_v6  ;;  %1451 = vmatprep.mubr.msk.f32.mxu0 %vm1567_vm1, %v1566_v2 }
 0x299   :  { %1437 = vmatprep.subr.mxu0 %v1566_v2 }
 0x29a   :  { %1438 = vmatpush3.msra.mxu0 %v1654_v7 }
 0x29b   :  { %1439 = vmatprep.subr.mxu0 %v1566_v2 }
 0x29c   :  { %1440 = vmatpush3.msra.mxu0 %v1663_v9 }
 0x29d   :  { %1441 = vmatprep.subr.mxu0 %v1566_v2 }
 0x29e   :  { %1442 = vmatpush3.msra.mxu0 %v1673_v11 }
 0x29f   :  { %1443 = vmatprep.subr.mxu0 %v1566_v2 }
 0x2a0   :  { %1444 = vmatpush3.msra.mxu0 %v1683_v13 }
 0x2a1   :  { %1445 = vmatprep.subr.mxu0 %v1566_v2 }
 0x2a2   :  { %1446 = vmatpush3.msra.mxu0 %v1698_v16 }
 0x2a3   :  { %1447 = vmatprep.subr.mxu0 %v1566_v2 }
 0x2a4   :  { %1448 = vmatpush3.msra.mxu0 %v1708_v18 }
 0x2a5   :  { %1449 = vmatprep.subr.mxu0 %v1566_v2 }
 0x2a6   :  { %1450 = vmatpush3.msra.mxu0 %v1726_v22 }
 0x2a7   :  { %1473 = vmatprep.subr.mxu0 %v1566_v2 }
 0x357   :  { %v585_v39 = vpop.f32.mrf.mxu0 }
 0x358   :  { %v589_v48 = vadd.f32 %v585_v39, %v500_v38 }
 0x359   :  { %v1415_v49 = vpop.f32.mrf.mxu0 }
 0x35a   :  { %1552 = vtanh.f32 %v589_v48 }
 0x367   :  { %v1553_v51 = vpop.eup %1552 }
 0x368   :  { %v592_v52 = vsel %vm591_vm7, %v1553_v51, %v495_v47 }
 0x369   :  { %1433 = vmatmul.mubr.msk.f32.vlgmr.msra.gmra.mxu1 %vm187_vm3, %v592_v52 }
 0x36a   :  { %1455 = vmatpush3.msra.mxu1 %v1648_v6  ;;  %1470 = vmatprep.mubr.msk.f32.mxu1 %vm1567_vm1, %v1566_v2 }
 0x36b   :  { %1456 = vmatprep.subr.mxu1 %v1566_v2 }
 0x36c   :  { %1457 = vmatpush3.msra.mxu1 %v1654_v7 }
 0x36d   :  { %1458 = vmatprep.subr.mxu1 %v1566_v2 }
 0x36e   :  { %1459 = vmatpush3.msra.mxu1 %v1663_v9 }
 0x36f   :  { %1460 = vmatprep.subr.mxu1 %v1566_v2 }
 0x370   :  { %1461 = vmatpush3.msra.mxu1 %v1673_v11 }
 0x371   :  { %1462 = vmatprep.subr.mxu1 %v1566_v2 }
 0x372   :  { %1463 = vmatpush3.msra.mxu1 %v1683_v13 }
 0x373   :  { %1464 = vmatprep.subr.mxu1 %v1566_v2 }
 0x374   :  { %1465 = vmatpush3.msra.mxu1 %v1698_v16 }
 0x375   :  { %1466 = vmatprep.subr.mxu1 %v1566_v2 }
 0x376   :  { %1467 = vmatpush3.msra.mxu1 %v1708_v18 }
 0x377   :  { %1468 = vmatprep.subr.mxu1 %v1566_v2 }
 0x378   :  { %1469 = vmatpush3.msra.mxu1 %v1726_v22 }
 0x379   :  { %1492 = vmatprep.subr.mxu1 %v1566_v2 }
 0x429   :  { %v664_v31 = vpop.f32.mrf.mxu1 }
 0x42a   :  { %v668_v41 = vadd.f32 %v664_v31, %v1860_v5 }
 0x42b   :  { %v1434_v42 = vpop.f32.mrf.mxu1 }
 0x42c   :  { %1554 = vtanh.f32 %v668_v41 }
 0x439   :  { %v1555_v53 = vpop.eup %1554 }
 0x43a   :  { %v671_v54 = vsel %vm670_vm8, %v1555_v53, %v592_v52 }
 0x43b   :  { %1452 = vmatmul.mubr.msk.f32.vlgmr.msra.gmra.mxu0 %vm187_vm3, %v671_v54 }
 0x43c   :  { %1474 = vmatpush3.msra.mxu0 %v1648_v6  ;;  %1489 = vmatprep.mubr.msk.f32.mxu0 %vm1567_vm1, %v1566_v2 }
 0x43d   :  { %1475 = vmatprep.subr.mxu0 %v1566_v2 }
 0x43e   :  { %1476 = vmatpush3.msra.mxu0 %v1654_v7 }
 0x43f   :  { %1477 = vmatprep.subr.mxu0 %v1566_v2 }
 0x440   :  { %1478 = vmatpush3.msra.mxu0 %v1663_v9 }
 0x441   :  { %1479 = vmatprep.subr.mxu0 %v1566_v2 }
 0x442   :  { %1480 = vmatpush3.msra.mxu0 %v1673_v11 }
 0x443   :  { %1481 = vmatprep.subr.mxu0 %v1566_v2 }
 0x444   :  { %1482 = vmatpush3.msra.mxu0 %v1683_v13 }
 0x445   :  { %1483 = vmatprep.subr.mxu0 %v1566_v2 }
 0x446   :  { %1484 = vmatpush3.msra.mxu0 %v1698_v16 }
 0x447   :  { %1485 = vmatprep.subr.mxu0 %v1566_v2 }
 0x448   :  { %1486 = vmatpush3.msra.mxu0 %v1708_v18 }
 0x449   :  { %1487 = vmatprep.subr.mxu0 %v1566_v2 }
 0x44a   :  { %1488 = vmatpush3.msra.mxu0 %v1726_v22 }
 0x44b   :  { %1511 = vmatprep.subr.mxu0 %v1566_v2 }
 0x4fb   :  { %v743_v6 = vpop.f32.mrf.mxu0 }
 0x4fc   :  { %v747_v7 = vadd.f32 %v743_v6, %v1850_v1  ;;  %v1002_v1 = vld [vmem:[%s2106_s7 + $0x20] sm:$0xff] }
 0x4fd   :  { %v1453_v9 = vpop.f32.mrf.mxu0 }
 0x4fe   :  { %1556 = vtanh.f32 %v747_v7 }
 0x50b   :  { %v1557_v11 = vpop.eup %1556 }
 0x50c   :  { %v750_v13 = vsel %vm749_vm9, %v1557_v11, %v671_v54 }
 0x50d   :  { %1471 = vmatmul.mubr.msk.f32.vlgmr.msra.gmra.mxu1 %vm187_vm3, %v750_v13 }
 0x50e   :  { %1508 = vmatprep.mubr.msk.f32.mxu1 %vm1567_vm1, %v1566_v2  ;;  %1493 = vmatpush3.msra.mxu1 %v916_v40 }
 0x50f   :  { %1494 = vmatprep.subr.mxu1 %v1566_v2 }
 0x510   :  { %1495 = vmatpush3.msra.mxu1 %v915_v56 }
 0x511   :  { %1496 = vmatprep.subr.mxu1 %v1566_v2 }
 0x512   :  { %1497 = vmatpush3.msra.mxu1 %v914_v35 }
 0x513   :  { %1498 = vmatprep.subr.mxu1 %v1566_v2 }
 0x514   :  { %1499 = vmatpush3.msra.mxu1 %v913_v57 }
 0x515   :  { %1500 = vmatprep.subr.mxu1 %v1566_v2 }
 0x516   :  { %1501 = vmatpush3.msra.mxu1 %v912_v58 }
 0x517   :  { %1502 = vmatprep.subr.mxu1 %v1566_v2 }
 0x518   :  { %1503 = vmatpush3.msra.mxu1 %v911_v59 }
 0x519   :  { %1504 = vmatprep.subr.mxu1 %v1566_v2 }
 0x51a   :  { %1505 = vmatpush3.msra.mxu1 %v910_v60 }
 0x51b   :  { %1506 = vmatprep.subr.mxu1 %v1566_v2 }
 0x51c   :  { %1507 = vmatpush3.msra.mxu1 %v909_v61 }
 0x51d   :  { %1530 = vmatprep.subr.mxu1 %v1566_v2 }
 0x5cd   :  { %v822_v16 = vpop.f32.mrf.mxu1 }
 0x5ce   :  { %v826_v18 = vadd.f32 %v822_v16, %v1870_v20 }
 0x5cf   :  { %v1472_v22 = vpop.f32.mrf.mxu1 }
 0x5d0   :  { %1558 = vtanh.f32 %v826_v18 }
 0x5dd   :  { %v1559_v43 = vpop.eup %1558 }
 0x5de   :  { %v829_v55 = vsel %vm828_vm10, %v1559_v43, %v750_v13 }
 0x5df   :  { %1490 = vmatmul.mubr.msk.f32.vlgmr.msra.gmra.mxu0 %vm187_vm3, %v829_v55 }
 0x5e0   :  { %1527 = vmatprep.mubr.msk.f32.mxu0 %vm1567_vm1, %v1566_v2  ;;  %1512 = vmatpush3.msra.mxu0 %v1005_v62 }
 0x5e1   :  { %1513 = vmatprep.subr.mxu0 %v1566_v2 }
 0x5e2   :  { %1514 = vmatpush3.msra.mxu0 %v1004_v63 }
 0x5e3   :  { %1515 = vmatprep.subr.mxu0 %v1566_v2 }
 0x5e4   :  { %1516 = vmatpush3.msra.mxu0 %v1003_v0 }
 0x5e5   :  { %1517 = vmatprep.subr.mxu0 %v1566_v2 }
 0x5e6   :  { %1518 = vmatpush3.msra.mxu0 %v1002_v1 }
 0x5e7   :  { %1519 = vmatprep.subr.mxu0 %v1566_v2 }
 0x5e8   :  { %1520 = vmatpush3.msra.mxu0 %v1001_v3 }
 0x5e9   :  { %1521 = vmatprep.subr.mxu0 %v1566_v2 }
 0x5ea   :  { %1522 = vmatpush3.msra.mxu0 %v1000_v15 }
 0x5eb   :  { %1523 = vmatprep.subr.mxu0 %v1566_v2 }
 0x69f   :  { %v901_v4 = vpop.f32.mrf.mxu0 }
 0x6a0   :  { %v905_v5 = vadd.f32 %v901_v4, %v1866_v14  ;;  %v999_v14 = vld [vmem:[%s2106_s7 + $0x8] sm:$0xff] }
 0x6a1   :  { %v1491_v8 = vpop.f32.mrf.mxu0  ;;  %1524 = vmatpush3.msra.mxu0 %v999_v14 }
 0x6a2   :  { %1560 = vtanh.f32 %v905_v5  ;;  %1525 = vmatprep.subr.mxu0 %v1566_v2 }
 0x6a3   :  { %1526 = vmatpush3.msra.mxu0 %v998_v37 }
 0x6af   :  { %v1561_v10 = vpop.eup %1560 }
 0x6b0   :  { %v908_v12 = vsel %vm907_vm11, %v1561_v10, %v829_v55 }
 0x6b1   :  { %1509 = vmatmul.mubr.msk.f32.vlgmr.msra.gmra.mxu1 %vm187_vm3, %v908_v12 }
 0x6b2   :  { %1538 = vmatprep.mubr.msk.f32.mxu1 %vm1567_vm1, %v1566_v2  ;;  %1531 = vmatpush3.msra.mxu1 %v1090_v17 }
 0x6b3   :  { %1532 = vmatprep.subr.mxu1 %v1566_v2 }
 0x6b4   :  { %1533 = vmatpush3.msra.mxu1 %v1089_v25 }
 0x6b5   :  { %1534 = vmatprep.subr.mxu1 %v1566_v2 }
 0x6b6   :  { %1535 = vmatpush3.msra.mxu1 %v1088_v26 }
 0x6b7   :  { %1536 = vmatprep.subr.mxu1 %v1566_v2 }
 0x6b8   :  { %1537 = vmatpush3.msra.mxu1 %v1087_v27 }
 0x771   :  { %v993_v20 = vpop.f32.mrf.mxu1 }
 0x772   :  { %v994_v21 = vadd.f32 %v1206_v19, %v993_v20 }
 0x773   :  { %v1510_v23 = vpop.f32.mrf.mxu1 }
 0x774   :  { %v997_v24 = vmax.f32 %v994_v21, 0.0 }
 0x776   :  { %1528 = vmatmul.mubr.msk.f32.vlgmr.msra.gmra.mxu0 %vm187_vm3, %v997_v24 }
 0x836   :  { %v1082_v29 = vpop.f32.mrf.mxu0 }
 0x837   :  { %v1083_v30 = vadd.f32 %v1208_v28, %v1082_v29 }
 0x838   :  { %v1529_v33 = vpop.f32.mrf.mxu0 }
 0x839   :  { %v1086_v32 = vmax.f32 %v1083_v30, 0.0 }
 0x83b   :  { %1539 = vmatmul.mubr.msk.f32.vlgmr.msra.gmra.mxu1 %vm57_vm0, %v1086_v32 }
 0x8fb   :  { %v1167_v2 = vpop.f32.mrf.mxu1 }
 0x8fc   :  { %v1168_v36 = vadd.f32 %v1210_v34, %v1167_v2 }
 0x8fd   :  { %v1540_v44 = vpop.f32.mrf.mxu1 }
 0x8fe   :  { %v1212_v45 = vmul.f32 -1.442695, %v1168_v36 }
 0x900   :  { %1562 = vpow2.f32 %v1212_v45 }
 0x90d   :  { %v1563_v46 = vpop.eup %1562 }
 0x90e   :  { %v1174_v47 = vadd.f32 1.0, %v1563_v46 }
 0x910   :  { %1564 = vrcp.f32 %v1174_v47 }
 0x91d   :  { %v1565_v38 = vpop.eup %1564 }
 0x91e   :  { %1178 = vst.msk [vmem:[%s2111_s11] sm:$0xff] %vm1177_vm12, %v1565_v38 }

</bundles_post_ra>
